<compile_context>
chip_gen: v7x
topology: tpu7x:2x2x1
jax: 0.10.0
libtpu: 0.0.40
codegen_flags: <defaults>
</compile_context>

<pallas_src>
import jax
import jax.numpy as jnp
from jax.experimental import pallas as pl
from jax.experimental.pallas import tpu as pltpu


# ----------------------------- Pallas kernel ------------------------------ #
def _conv_block_1_kernel(x_ref, w1_ref, t1_ref, w2_ref, t2_ref, o_ref):
    """One (Cin, TM) input tile -> one (Cout, TM) output tile, both layers fused."""
    x = x_ref[...].astype(jnp.float32)                       # (Cin, TM)

    # layer 1: 1x1x1 conv (channel matmul, BN scale pre-folded) + shift + ReLU
    h = jnp.dot(w1_ref[...], x, preferred_element_type=jnp.float32)   # (Cout, TM)
    h = jnp.maximum(h + t1_ref[...], 0.0)

    # layer 2
    y = jnp.dot(w2_ref[...], h, preferred_element_type=jnp.float32)   # (Cout, TM)
    y = jnp.maximum(y + t2_ref[...], 0.0)

    o_ref[...] = y.astype(o_ref.dtype)


# ------------------------------- helpers ----------------------------------- #
def _fold_bn_into_weights(w, bias, bn):
    """Fold conv bias + eval-mode BatchNorm into (scaled weight, shift)."""
    gamma, beta, mean, var, eps = bn
    scale = (gamma / jnp.sqrt(var + eps)).astype(jnp.float32)          # (Cout,)
    w_f = w.reshape(w.shape[0], w.shape[1]).astype(jnp.float32)        # (Cout, Cin)
    w_scaled = w_f * scale[:, None]
    shift = (beta + (bias - mean) * scale).astype(jnp.float32)         # (Cout,)
    return w_scaled, shift


def _choose_tm(M, N, Cin, Cout, itemsize):
    """Spatial (lane) tile: big enough to amortize per-step overhead, VMEM-safe,
    a multiple of 128 that divides M exactly (so no pad / slice is needed)."""
    per_spatial = (Cin + Cout) * itemsize          # bytes streamed per voxel
    target_bytes = 2 << 20                         # ~2 MiB moved per grid step
    vmem_budget = 8 << 20                          # double-buffered in+out tiles
    tm_cap = max(128, vmem_budget // (2 * per_spatial))
    tm = min(M, max(128, target_bytes // per_spatial), tm_cap)

    if M % 128 != 0:
        return M                                   # single full-extent M block

    units = M // 128
    t = max(1, min(units, tm // 128))
    while units % t:                               # largest divisor <= t
        t -= 1
    tm = t * 128

    # megacore balance (v7x: 2 TCs): keep >= 2 parallel grid steps if possible
    if N * (M // tm) < 2 and units >= 2:
        t = units // 2
        while t > 0 and units % t:
            t -= 1
        if t > 0:
            tm = t * 128
    return tm


# ------------------------------- wrapper ----------------------------------- #
def conv_block_1_forward(x_ncdhw, p):
    """Matches conv_block_1.forward (inference-mode BN). Input/output NCDHW."""
    N, Cin, D, H, W = x_ncdhw.shape
    Cout = p["w1"].shape[0]
    M = D * H * W
    itemsize = jnp.dtype(x_ncdhw.dtype).itemsize

    # Pure reshape (metadata only) — no pad, no dtype cast, no extra HBM pass.
    x = x_ncdhw.reshape(N, Cin, M)

    w1, t1 = _fold_bn_into_weights(p["w1"], p["b1"], p["bn1"])
    w2, t2 = _fold_bn_into_weights(p["w2"], p["b2"], p["bn2"])

    tm = _choose_tm(M, N, Cin, Cout, itemsize)
    grid = (N, M // tm)

    cost = pl.CostEstimate(
        flops=2 * N * M * (Cin * Cout + Cout * Cout),
        transcendentals=0,
        bytes_accessed=N * M * (Cin + Cout) * itemsize,
    )

    out = pl.pallas_call(
        _conv_block_1_kernel,
        out_shape=jax.ShapeDtypeStruct((N, Cout, M), x_ncdhw.dtype),
        grid_spec=pltpu.PrefetchScalarGridSpec(
            num_scalar_prefetch=0,
            grid=grid,
            in_specs=[
                # streamed input tile: channels on sublanes, spatial on lanes
                pl.BlockSpec((pl.Squeezed(), Cin, tm), lambda n, m: (n, 0, m)),
                # folded weights / shifts: constant index map -> VMEM resident
                pl.BlockSpec((Cout, Cin), lambda n, m: (0, 0)),
                pl.BlockSpec((Cout, 1), lambda n, m: (0, 0)),
                pl.BlockSpec((Cout, Cout), lambda n, m: (0, 0)),
                pl.BlockSpec((Cout, 1), lambda n, m: (0, 0)),
            ],
            out_specs=pl.BlockSpec((pl.Squeezed(), Cout, tm),
                                   lambda n, m: (n, 0, m)),
        ),
        compiler_params=pltpu.CompilerParams(
            dimension_semantics=("parallel", "parallel"),
            vmem_limit_bytes=32 << 20),
        cost_estimate=cost,
    )(x, w1, t1.reshape(Cout, 1), w2, t2.reshape(Cout, 1))

    return out.reshape(N, Cout, D, H, W)


# --------------------------- pure-JAX reference ----------------------------- #
def _reference_forward(x_ncdhw, p):
    def layer(x, w, b, bn):
        cout, cin = w.shape[0], w.shape[1]
        n = x.shape[0]
        z = jnp.einsum("oc,ncm->nom",
                       w.reshape(cout, cin).astype(jnp.float32),
                       x.reshape(n, cin, -1).astype(jnp.float32))
        z = z + b[None, :, None]
        gamma, beta, mean, var, eps = bn
        s = gamma / jnp.sqrt(var + eps)
        z = (z - mean[None, :, None]) * s[None, :, None] + beta[None, :, None]
        return jnp.maximum(z, 0.0).reshape(n, cout, *x.shape[2:])

    y = layer(x_ncdhw, p["w1"], p["b1"], p["bn1"])
    return layer(y, p["w2"], p["b2"], p["bn2"])


# --------------------------- parameter creation ---------------------------- #
def init_params(key, ch_in, ch_out):
    # TODO(synk): BatchNorm3d is applied in inference mode with deterministic
    # running stats (train-mode batch statistics are not reproduced here).
    def bn(k, c):
        k1, k2, k3, k4 = jax.random.split(k, 4)
        gamma = 1.0 + 0.1 * jax.random.normal(k1, (c,), jnp.float32)
        beta = 0.1 * jax.random.normal(k2, (c,), jnp.float32)
        mean = 0.1 * jax.random.normal(k3, (c,), jnp.float32)
        var = 0.5 + jax.random.uniform(k4, (c,), jnp.float32)
        return (gamma, beta, mean, var, 1e-5)

    ks = jax.random.split(key, 6)
    return {
        "w1": 0.1 * jax.random.normal(ks[0], (ch_out, ch_in, 1, 1, 1), jnp.float32),
        "b1": 0.1 * jax.random.normal(ks[1], (ch_out,), jnp.float32),
        "bn1": bn(ks[2], ch_out),
        "w2": 0.1 * jax.random.normal(ks[3], (ch_out, ch_out, 1, 1, 1), jnp.float32),
        "b2": 0.1 * jax.random.normal(ks[4], (ch_out,), jnp.float32),
        "bn2": bn(ks[5], ch_out),
    }


if __name__ == "__main__":
    key = jax.random.PRNGKey(0)
    k_x, k_p = jax.random.split(key)

    batch, ch_in, ch_out, sp = 2, 4, 8, 16
    x = jax.random.normal(k_x, (batch, ch_in, sp, sp, sp), jnp.float32)  # NCDHW
    params = init_params(k_p, ch_in, ch_out)

    fwd = jax.jit(conv_block_1_forward)
    out = fwd(x, params)
    out = jax.block_until_ready(out)

    assert out.shape == (batch, ch_out, sp, sp, sp)

    ref = jax.block_until_ready(_reference_forward(x, params))
    err = jnp.max(jnp.abs(out.astype(jnp.float32) - ref))
    assert err < 1e-3, f"max abs error {err}"

    print("KERNEL_OK")
</pallas_src>

<mosaic_0001>
module attributes {stable_mosaic.version = 11 : i64} {
  func.func @_conv_block_1_kernel(%arg0: i32, %arg1: i32, %arg2: memref<1x4x4096xf32, #tpu.memory_space<vmem>>, %arg3: memref<8x4xf32, #tpu.memory_space<vmem>>, %arg4: memref<8x1xf32, #tpu.memory_space<vmem>>, %arg5: memref<8x8xf32, #tpu.memory_space<vmem>>, %arg6: memref<8x1xf32, #tpu.memory_space<vmem>>, %arg7: memref<1x8x4096xf32, #tpu.memory_space<vmem>>) attributes {dimension_semantics = [#tpu.dimension_semantics<parallel>, #tpu.dimension_semantics<parallel>], iteration_bounds = array<i64: 2, 1>, scalar_prefetch = 0 : i64, scratch_operands = 0 : i64, tpu.core_type = #tpu.core_type<tc>, window_params = [{transform_indices = @transform_0, window_bounds = array<i64: 1, 4, 4096>}, {pipeline_mode = #tpu.pipeline_mode<synchronous>, transform_indices = @transform_1, window_bounds = array<i64: 8, 4>}, {pipeline_mode = #tpu.pipeline_mode<synchronous>, transform_indices = @transform_2, window_bounds = array<i64: 8, 1>}, {pipeline_mode = #tpu.pipeline_mode<synchronous>, transform_indices = @transform_3, window_bounds = array<i64: 8, 8>}, {pipeline_mode = #tpu.pipeline_mode<synchronous>, transform_indices = @transform_4, window_bounds = array<i64: 8, 1>}, {transform_indices = @transform_5, window_bounds = array<i64: 1, 8, 4096>}]} {
    %c0 = arith.constant 0 : index
    %c0_0 = arith.constant 0 : index
    %c0_1 = arith.constant 0 : index
    %0 = vector.load %arg2[%c0, %c0_0, %c0_1] : memref<1x4x4096xf32, #tpu.memory_space<vmem>>, vector<1x4x4096xf32>
    %1 = vector.shape_cast %0 : vector<1x4x4096xf32> to vector<4x4096xf32>
    %c0_2 = arith.constant 0 : index
    %c0_3 = arith.constant 0 : index
    %2 = vector.load %arg3[%c0_2, %c0_3] : memref<8x4xf32, #tpu.memory_space<vmem>>, vector<8x4xf32>
    %cst = arith.constant dense<0.000000e+00> : vector<8x4096xf32>
    %3 = tpu.matmul %2, %1, %cst {dimension_numbers = #tpu.dot_dimension_numbers<[1], [0], [0], [1], [0, 0, 1, 1], [], []>} : vector<8x4xf32>, vector<4x4096xf32>, vector<8x4096xf32> -> vector<8x4096xf32>
    %c0_4 = arith.constant 0 : index
    %c0_5 = arith.constant 0 : index
    %4 = vector.load %arg4[%c0_4, %c0_5] : memref<8x1xf32, #tpu.memory_space<vmem>>, vector<8x1xf32>
    %5 = vector.broadcast %4 : vector<8x1xf32> to vector<8x4096xf32>
    %6 = arith.addf %3, %5 : vector<8x4096xf32>
    %cst_6 = arith.constant 0.000000e+00 : f32
    %7 = vector.broadcast %cst_6 : f32 to vector<8x4096xf32>
    %8 = arith.maximumf %6, %7 : vector<8x4096xf32>
    %c0_7 = arith.constant 0 : index
    %c0_8 = arith.constant 0 : index
    %9 = vector.load %arg5[%c0_7, %c0_8] : memref<8x8xf32, #tpu.memory_space<vmem>>, vector<8x8xf32>
    %cst_9 = arith.constant dense<0.000000e+00> : vector<8x4096xf32>
    %10 = tpu.matmul %9, %8, %cst_9 {dimension_numbers = #tpu.dot_dimension_numbers<[1], [0], [0], [1], [0, 0, 1, 1], [], []>} : vector<8x8xf32>, vector<8x4096xf32>, vector<8x4096xf32> -> vector<8x4096xf32>
    %c0_10 = arith.constant 0 : index
    %c0_11 = arith.constant 0 : index
    %11 = vector.load %arg6[%c0_10, %c0_11] : memref<8x1xf32, #tpu.memory_space<vmem>>, vector<8x1xf32>
    %12 = vector.broadcast %11 : vector<8x1xf32> to vector<8x4096xf32>
    %13 = arith.addf %10, %12 : vector<8x4096xf32>
    %cst_12 = arith.constant 0.000000e+00 : f32
    %14 = vector.broadcast %cst_12 : f32 to vector<8x4096xf32>
    %15 = arith.maximumf %13, %14 : vector<8x4096xf32>
    %c0_13 = arith.constant 0 : index
    %c0_14 = arith.constant 0 : index
    %c0_15 = arith.constant 0 : index
    %16 = vector.load %arg7[%c0_13, %c0_14, %c0_15] : memref<1x8x4096xf32, #tpu.memory_space<vmem>>, vector<1x8x4096xf32>
    %17 = vector.shape_cast %16 : vector<1x8x4096xf32> to vector<8x4096xf32>
    %18 = vector.shape_cast %15 : vector<8x4096xf32> to vector<1x8x4096xf32>
    tpu.vector_store %arg7[%c0_13, %c0_14, %c0_15], %18 {strides = array<i32>} : memref<1x8x4096xf32, #tpu.memory_space<vmem>>, vector<1x8x4096xf32>,
    return
  }
  func.func @transform_0(%arg0: i32, %arg1: i32) -> (i32, i32, i32) {
    %c0_i32 = arith.constant 0 : i32
    %c0_i32_0 = arith.constant 0 : i32
    return %arg0, %c0_i32, %arg1 : i32, i32, i32
  }
  func.func @transform_1(%arg0: i32, %arg1: i32) -> (i32, i32) {
    %c0_i32 = arith.constant 0 : i32
    %c0_i32_0 = arith.constant 0 : i32
    %c0_i32_1 = arith.constant 0 : i32
    return %c0_i32, %c0_i32_0 : i32, i32
  }
  func.func @transform_2(%arg0: i32, %arg1: i32) -> (i32, i32) {
    %c0_i32 = arith.constant 0 : i32
    %c0_i32_0 = arith.constant 0 : i32
    %c0_i32_1 = arith.constant 0 : i32
    return %c0_i32, %c0_i32_0 : i32, i32
  }
  func.func @transform_3(%arg0: i32, %arg1: i32) -> (i32, i32) {
    %c0_i32 = arith.constant 0 : i32
    %c0_i32_0 = arith.constant 0 : i32
    %c0_i32_1 = arith.constant 0 : i32
    return %c0_i32, %c0_i32_0 : i32, i32
  }
  func.func @transform_4(%arg0: i32, %arg1: i32) -> (i32, i32) {
    %c0_i32 = arith.constant 0 : i32
    %c0_i32_0 = arith.constant 0 : i32
    %c0_i32_1 = arith.constant 0 : i32
    return %c0_i32, %c0_i32_0 : i32, i32
  }
  func.func @transform_5(%arg0: i32, %arg1: i32) -> (i32, i32, i32) {
    %c0_i32 = arith.constant 0 : i32
    %c0_i32_0 = arith.constant 0 : i32
    return %arg0, %c0_i32, %arg1 : i32, i32, i32
  }
}

</mosaic_0001>

<bundles_post_ra>
// kernel: conv_block_1_forward.1
= control target key start
LH: loop header
LB: loop body
LE: loop exit
PB: predicated region body
PF: predicated region fallthrough
CT: control target
= control target key end

     0   :  { %s3030_s18 = smov 0   ;;  %s3032_s19 = smov 0   ;;  %s3331_s0 = inlined_call_operand.vmem [shape: f32[2,4,4096], index: 0, kind: input, shape index: {}]   ;;  %s3332_s1 = inlined_call_operand.vmem [shape: f32[8,4], index: 1, kind: input, shape index: {}]   ;;  %s3333_s2 = inlined_call_operand.vmem [shape: f32[8,1], index: 2, kind: input, shape index: {}]   ;;  %s3334_s3 = inlined_call_operand.vmem [shape: f32[8,8], index: 3, kind: input, shape index: {}]   ;;  %s3335_s4 = inlined_call_operand.vmem [shape: f32[8,1], index: 4, kind: input, shape index: {}]   ;;  %s3336_s5 = inlined_call_operand.vmem [shape: f32[2,8,4096], index: 5, kind: output, shape index: {}]  }
   0x1   :  { %s3034_s20 = smov 0  }
   0x2 LB: > { %s27_s21 = sadd.s32 1, %s2992_s19  ;;  %p2858_p0 = scmp.ge.s32.totalorder %s2996_s20, 1  ;;  %s2996_s20 = sphi %s3034_s20, %s15_s20   ;;  %s2992_s19 = sphi %s3032_s19, %s3338_s19   ;;  %s2988_s18 = sphi %s3030_s18, %s3337_s18  }
   0x3   : > { %p29_p1 = scmp.ge.s32.totalorder %s27_s21, 2  ;;  %p208_p2 = scmp.lt.s32.totalorder %s2996_s20, 3 }
   0x5   : > { %s3340_s21 = smov (%p29_p1, %s27_s21), 0  ;;  %p209_p3 = pnand %p2858_p0, %p208_p2 }
   0x6   : > { %p245_p4 = scmp.lt.s32.totalorder (!%p209_p3), %s2988_s18, 1  ;;  %v2998_v0 = vmov (!%p209_p3), 0.0   ;;  %v281_v1 = vld [vmem:[%s3333_s2] sm:$0xff] (!%p209_p3)  ;;  %v2999_v2 = vmov (!%p209_p3), 0   ;;  %vm323_vm0 = vcmask (!%p209_p3), 1043456   ;;  %vm319_vm1 = vcmask (!%p209_p3), 31744  }
   0x7   : > { %212 = sbr.rel (%p209_p3) target bundleno = 487 (0x1e7), region = 40  ;;  %452 = vmatprep.mubr.f32.mxu0 (!%p209_p3), %v2998_v0  ;;  %523 = vmatprep.mubr.f32.mxu1 (!%p209_p3), %v2998_v0  ;;  %v1557_v3 = vld [vmem:[%s3335_s4] sm:$0xff] (!%p209_p3)  ;;  %vm1563_vm2 = vcmask (!%p209_p3), 64512  }
   0x8   : > { %2957 = vset.pattern.permute.xlu0 (!%p209_p3), %v2999_v2  ;;  %v3071_v10 = vld [vmem:[%s3332_s1] sm:$0xff] (!%p209_p3) }
   0x9   : > { %284 = vperm.xlu0 (!%p209_p3), %2957, %v281_v1   ;;  %v3176_v56 = vld [vmem:[%s3334_s3] sm:$0xff] (!%p209_p3) }
   0xd   : > { %1560 = vperm.xlu0 (!%p209_p3), %2957, %v1557_v3  }
   0xe   : > { %s3342_s18 = smov (!%p245_p4, %s2988_s18), 1 }
   0xf   : > { %s2929_s24 = sshll.u32 %s3342_s18, 7  ;;  %s2930_s9 = sshll.u32 %s3342_s18, 8 }
  0x10   : > { %s3062_s29 = scalar_lea.vmem %s3331_s0, %s2929_s24  ;;  %s3258_s12 = scalar_lea.vmem %s3336_s5, %s2930_s9 }
  0x11   : > { %v264_v4 = vld [vmem:[%s3062_s29] sm:$0xff]  ;;  %v265_v5 = vld [vmem:[%s3062_s29 + $0x8] sm:$0xff]  ;;  %v266_v6 = vld [vmem:[%s3062_s29 + $0x10] sm:$0xff] }
  0x12   : > { %v303_v7 = vcombine.high %v264_v4, %v264_v4  ;;  %v304_v8 = vcombine.high %v265_v5, %v265_v5  ;;  %v267_v9 = vld [vmem:[%s3062_s29 + $0x18] sm:$0xff]  ;;  %v305_v11 = vcombine.high %v266_v6, %v266_v6  ;;  %v268_v13 = vld [vmem:[%s3062_s29 + $0x20] sm:$0xff]  ;;  %v269_v14 = vld [vmem:[%s3062_s29 + $0x28] sm:$0xff] }
  0x13   : > { %v306_v12 = vcombine.high %v267_v9, %v267_v9  ;;  %v307_v15 = vcombine.high %v268_v13, %v268_v13  ;;  %v308_v16 = vcombine.high %v269_v14, %v269_v14  ;;  %v270_v17 = vld [vmem:[%s3062_s29 + $0x30] sm:$0xff]  ;;  %v271_v18 = vld [vmem:[%s3062_s29 + $0x38] sm:$0xff]  ;;  %v272_v21 = vld [vmem:[%s3062_s29 + $0x40] sm:$0xff] }
  0x14   : > { %2863 = vmatprep.subr.msk.mxu0 %vm323_vm0, %v303_v7  ;;  %2866 = vmatprep.subr.msk.mxu1 %vm323_vm0, %v304_v8  ;;  %v309_v19 = vcombine.high %v270_v17, %v270_v17  ;;  %v310_v20 = vcombine.high %v271_v18, %v271_v18  ;;  %v273_v22 = vld [vmem:[%s3062_s29 + $0x48] sm:$0xff]  ;;  %v311_v23 = vcombine.high %v272_v21, %v272_v21  ;;  %v274_v25 = vld [vmem:[%s3062_s29 + $0x50] sm:$0xff]  ;;  %v275_v26 = vld [vmem:[%s3062_s29 + $0x58] sm:$0xff] }
  0x15   : > { %2864 = vmatpush1.msk.msra.mxu0 %vm323_vm0, %v264_v4  ;;  %2867 = vmatpush1.msk.msra.mxu1 %vm323_vm0, %v265_v5  ;;  %v312_v24 = vcombine.high %v273_v22, %v273_v22  ;;  %v313_v27 = vcombine.high %v274_v25, %v274_v25  ;;  %v314_v28 = vcombine.high %v275_v26, %v275_v26  ;;  %v276_v29 = vld [vmem:[%s3062_s29 + $0x60] sm:$0xff]  ;;  %v277_v30 = vld [vmem:[%s3062_s29 + $0x68] sm:$0xff]  ;;  %v278_v33 = vld [vmem:[%s3062_s29 + $0x70] sm:$0xff] }
  0x16   : > { %2865 = vmatmul.mubr.msk.f32.vlgmr.msra.gmra.mrb[0].mxu0 %vm319_vm1, %v3071_v10  ;;  %2868 = vmatmul.mubr.msk.f32.vlgmr.msra.gmra.mrb[0].mxu1 %vm319_vm1, %v3071_v10  ;;  %v315_v31 = vcombine.high %v276_v29, %v276_v29  ;;  %v316_v32 = vcombine.high %v277_v30, %v277_v30  ;;  %v279_v34 = vld [vmem:[%s3062_s29 + $0x78] sm:$0xff]  ;;  %v317_v35 = vcombine.high %v278_v33, %v278_v33 }
  0x17   : > { %2869 = vmatprep.subr.msk.mxu0 %vm323_vm0, %v305_v11  ;;  %2872 = vmatprep.subr.msk.mxu1 %vm323_vm0, %v306_v12  ;;  %v318_v36 = vcombine.high %v279_v34, %v279_v34 }
  0x18   : > { %2870 = vmatpush1.msk.msra.mxu0 %vm323_vm0, %v266_v6  ;;  %594 = vmatprep.mubr.f32.mxu0 %v2998_v0 }
  0x19   : > { %2873 = vmatpush1.msk.msra.mxu1 %vm323_vm0, %v267_v9  ;;  %665 = vmatprep.mubr.f32.mxu1 %v2998_v0 }
  0x1a   : > { %2871 = vmatmul.mubr.msk.f32.vlgmr.msra.gmra.mrb[2].mxu0 %vm319_vm1, %v3071_v10  ;;  %2874 = vmatmul.mubr.msk.f32.vlgmr.msra.gmra.mrb[2].mxu1 %vm319_vm1, %v3071_v10 }
  0x1b   : > { %2875 = vmatprep.subr.msk.mxu0 %vm323_vm0, %v307_v15  ;;  %2878 = vmatprep.subr.msk.mxu1 %vm323_vm0, %v308_v16 }
  0x1c   : > { %2876 = vmatpush1.msk.msra.mxu0 %vm323_vm0, %v268_v13  ;;  %736 = vmatprep.mubr.f32.mxu0 %v2998_v0 }
  0x1d   : > { %2879 = vmatpush1.msk.msra.mxu1 %vm323_vm0, %v269_v14  ;;  %807 = vmatprep.mubr.f32.mxu1 %v2998_v0 }
  0x1e   : > { %2877 = vmatmul.mubr.msk.f32.vlgmr.msra.gmra.mrb[4].mxu0 %vm319_vm1, %v3071_v10  ;;  %2880 = vmatmul.mubr.msk.f32.vlgmr.msra.gmra.mrb[4].mxu1 %vm319_vm1, %v3071_v10 }
  0x1f   : > { %2881 = vmatprep.subr.msk.mxu0 %vm323_vm0, %v309_v19  ;;  %2884 = vmatprep.subr.msk.mxu1 %vm323_vm0, %v310_v20 }
  0x20   : > { %2882 = vmatpush1.msk.msra.mxu0 %vm323_vm0, %v270_v17  ;;  %878 = vmatprep.mubr.f32.mxu0 %v2998_v0 }
  0x21   : > { %2885 = vmatpush1.msk.msra.mxu1 %vm323_vm0, %v271_v18  ;;  %949 = vmatprep.mubr.f32.mxu1 %v2998_v0 }
  0x22   : > { %2883 = vmatmul.mubr.msk.f32.vlgmr.msra.gmra.mrb[6].mxu0 %vm319_vm1, %v3071_v10  ;;  %2886 = vmatmul.mubr.msk.f32.vlgmr.msra.gmra.mrb[6].mxu1 %vm319_vm1, %v3071_v10 }
  0x23   : > { %2887 = vmatprep.subr.msk.mxu0 %vm323_vm0, %v311_v23  ;;  %2890 = vmatprep.subr.msk.mxu1 %vm323_vm0, %v312_v24 }
  0x24   : > { %2888 = vmatpush1.msk.msra.mxu0 %vm323_vm0, %v272_v21  ;;  %1020 = vmatprep.mubr.f32.mxu0 %v2998_v0 }
  0x25   : > { %2891 = vmatpush1.msk.msra.mxu1 %vm323_vm0, %v273_v22  ;;  %1091 = vmatprep.mubr.f32.mxu1 %v2998_v0 }
  0x26   : > { %2889 = vmatmul.mubr.msk.f32.vlgmr.msra.gmra.mrb[8].mxu0 %vm319_vm1, %v3071_v10  ;;  %2892 = vmatmul.mubr.msk.f32.vlgmr.msra.gmra.mrb[8].mxu1 %vm319_vm1, %v3071_v10 }
  0x27   : > { %2893 = vmatprep.subr.msk.mxu0 %vm323_vm0, %v313_v27  ;;  %2896 = vmatprep.subr.msk.mxu1 %vm323_vm0, %v314_v28 }
  0x28   : > { %2894 = vmatpush1.msk.msra.mxu0 %vm323_vm0, %v274_v25  ;;  %1162 = vmatprep.mubr.f32.mxu0 %v2998_v0 }
  0x29   : > { %2897 = vmatpush1.msk.msra.mxu1 %vm323_vm0, %v275_v26  ;;  %1233 = vmatprep.mubr.f32.mxu1 %v2998_v0 }
  0x2a   : > { %2895 = vmatmul.mubr.msk.f32.vlgmr.msra.gmra.mrb[10].mxu0 %vm319_vm1, %v3071_v10  ;;  %2898 = vmatmul.mubr.msk.f32.vlgmr.msra.gmra.mrb[10].mxu1 %vm319_vm1, %v3071_v10 }
  0x2b   : > { %2899 = vmatprep.subr.msk.mxu0 %vm323_vm0, %v315_v31  ;;  %2902 = vmatprep.subr.msk.mxu1 %vm323_vm0, %v316_v32 }
  0x2c   : > { %2900 = vmatpush1.msk.msra.mxu0 %vm323_vm0, %v276_v29  ;;  %1304 = vmatprep.mubr.f32.mxu0 %v2998_v0 }
  0x2d   : > { %2903 = vmatpush1.msk.msra.mxu1 %vm323_vm0, %v277_v30  ;;  %1375 = vmatprep.mubr.f32.mxu1 %v2998_v0 }
  0x2e   : > { %2901 = vmatmul.mubr.msk.f32.vlgmr.msra.gmra.mrb[12].mxu0 %vm319_vm1, %v3071_v10  ;;  %2904 = vmatmul.mubr.msk.f32.vlgmr.msra.gmra.mrb[12].mxu1 %vm319_vm1, %v3071_v10 }
  0x2f   : > { %2905 = vmatprep.subr.msk.mxu0 %vm323_vm0, %v317_v35  ;;  %2908 = vmatprep.subr.msk.mxu1 %vm323_vm0, %v318_v36 }
  0x30   : > { %2906 = vmatpush1.msk.msra.mxu0 %vm323_vm0, %v278_v33  ;;  %1446 = vmatprep.mubr.f32.mxu0 %v2998_v0 }
  0x31   : > { %2909 = vmatpush1.msk.msra.mxu1 %vm323_vm0, %v279_v34  ;;  %1517 = vmatprep.mubr.f32.mxu1 %v2998_v0 }
  0x32   : > { %2907 = vmatmul.mubr.msk.f32.vlgmr.msra.gmra.mrb[14].mxu0 %vm319_vm1, %v3071_v10  ;;  %2910 = vmatmul.mubr.msk.f32.vlgmr.msra.gmra.mrb[14].mxu1 %vm319_vm1, %v3071_v10 }
  0x33   : > { %1631 = vmatprep.mubr.f32.mxu0 %v2998_v0  ;;  %1702 = vmatprep.mubr.f32.mxu1 %v2998_v0 }
  0x88   : > { %v3165_v37 = vpop.permute.xlu0 %284 }
  0xe9   : > { %v454_v38 = vpop.f32.mrb[0].mxu0  ;;  %v525_v39 = vpop.f32.mrb[0].mxu1 }
  0xea   : > { %v455_v40 = vadd.f32 %v454_v38, %v3165_v37  ;;  %v526_v41 = vadd.f32 %v525_v39, %v3165_v37  ;;  %v456_v42 = vpop.f32.mrb[1].mxu0  ;;  %v527_v43 = vpop.f32.mrb[1].mxu1 }
  0xeb   : > { %v457_v44 = vadd.f32 %v456_v42, %v3165_v37  ;;  %v528_v45 = vadd.f32 %v527_v43, %v3165_v37 }
  0xec   : > { %v1524_v50 = vmax.f32 %v455_v40, 0.0  ;;  %v1526_v51 = vmax.f32 %v526_v41, 0.0 }
  0xed   : > { %v1525_v46 = vmax.f32 %v457_v44, 0.0  ;;  %v1527_v47 = vmax.f32 %v528_v45, 0.0  ;;  %v596_v48 = vpop.f32.mrb[2].mxu0  ;;  %v667_v49 = vpop.f32.mrb[2].mxu1 }
  0xee   : > { %v597_v52 = vadd.f32 %v596_v48, %v3165_v37  ;;  %v668_v53 = vadd.f32 %v667_v49, %v3165_v37  ;;  %v598_v54 = vpop.f32.mrb[3].mxu0  ;;  %v669_v55 = vpop.f32.mrb[3].mxu1 }
  0xef   : > { %v599_v57 = vadd.f32 %v598_v54, %v3165_v37  ;;  %v670_v58 = vadd.f32 %v669_v55, %v3165_v37  ;;  %1567 = vmatprep.subr.mxu0 %v1525_v46  ;;  %1638 = vmatprep.subr.mxu1 %v1527_v47 }
  0xf0   : > { %1568 = vmatpush1.msra.mxu0 %v1524_v50  ;;  %1639 = vmatpush1.msra.mxu1 %v1526_v51  ;;  %v1528_v63 = vmax.f32 %v597_v52, 0.0  ;;  %v1530_v1 = vmax.f32 %v668_v53, 0.0 }
  0xf1   : > { %v1529_v59 = vmax.f32 %v599_v57, 0.0  ;;  %v1531_v60 = vmax.f32 %v670_v58, 0.0  ;;  %v738_v61 = vpop.f32.mrb[4].mxu0  ;;  %v809_v62 = vpop.f32.mrb[4].mxu1  ;;  %2911 = vmatmul.mubr.msk.f32.vlgmr.msra.gmra.mrb[16].mxu0 %vm1563_vm2, %v3176_v56  ;;  %2912 = vmatmul.mubr.msk.f32.vlgmr.msra.gmra.mrb[16].mxu1 %vm1563_vm2, %v3176_v56 }
  0xf2   : > { %v739_v2 = vadd.f32 %v738_v61, %v3165_v37  ;;  %v810_v3 = vadd.f32 %v809_v62, %v3165_v37  ;;  %v740_v4 = vpop.f32.mrb[5].mxu0  ;;  %v811_v5 = vpop.f32.mrb[5].mxu1  ;;  %1773 = vmatprep.mubr.f32.mxu0 %v2998_v0  ;;  %1844 = vmatprep.mubr.f32.mxu1 %v2998_v0 }
  0xf3   : > { %v741_v6 = vadd.f32 %v740_v4, %v3165_v37  ;;  %v812_v7 = vadd.f32 %v811_v5, %v3165_v37  ;;  %1709 = vmatprep.subr.mxu0 %v1529_v59  ;;  %1780 = vmatprep.subr.mxu1 %v1531_v60 }
  0xf4   : > { %1710 = vmatpush1.msra.mxu0 %v1528_v63  ;;  %1781 = vmatpush1.msra.mxu1 %v1530_v1  ;;  %v1532_v12 = vmax.f32 %v739_v2, 0.0  ;;  %v1534_v13 = vmax.f32 %v810_v3, 0.0 }
  0xf5   : > { %v1533_v8 = vmax.f32 %v741_v6, 0.0  ;;  %v1535_v9 = vmax.f32 %v812_v7, 0.0  ;;  %v880_v10 = vpop.f32.mrb[6].mxu0  ;;  %v951_v11 = vpop.f32.mrb[6].mxu1  ;;  %2913 = vmatmul.mubr.msk.f32.vlgmr.msra.gmra.mrb[18].mxu0 %vm1563_vm2, %v3176_v56  ;;  %2914 = vmatmul.mubr.msk.f32.vlgmr.msra.gmra.mrb[18].mxu1 %vm1563_vm2, %v3176_v56 }
  0xf6   : > { %v881_v14 = vadd.f32 %v880_v10, %v3165_v37  ;;  %v952_v15 = vadd.f32 %v951_v11, %v3165_v37  ;;  %v882_v16 = vpop.f32.mrb[7].mxu0  ;;  %v953_v17 = vpop.f32.mrb[7].mxu1  ;;  %1915 = vmatprep.mubr.f32.mxu0 %v2998_v0  ;;  %1986 = vmatprep.mubr.f32.mxu1 %v2998_v0 }
  0xf7   : > { %v883_v18 = vadd.f32 %v882_v16, %v3165_v37  ;;  %v954_v19 = vadd.f32 %v953_v17, %v3165_v37  ;;  %1851 = vmatprep.subr.mxu0 %v1533_v8  ;;  %1922 = vmatprep.subr.mxu1 %v1535_v9 }
  0xf8   : > { %1852 = vmatpush1.msra.mxu0 %v1532_v12  ;;  %1923 = vmatpush1.msra.mxu1 %v1534_v13  ;;  %v1536_v24 = vmax.f32 %v881_v14, 0.0  ;;  %v1538_v25 = vmax.f32 %v952_v15, 0.0 }
  0xf9   : > { %v1537_v20 = vmax.f32 %v883_v18, 0.0  ;;  %v1539_v21 = vmax.f32 %v954_v19, 0.0  ;;  %v1022_v22 = vpop.f32.mrb[8].mxu0  ;;  %v1093_v23 = vpop.f32.mrb[8].mxu1  ;;  %2915 = vmatmul.mubr.msk.f32.vlgmr.msra.gmra.mrb[20].mxu0 %vm1563_vm2, %v3176_v56  ;;  %2916 = vmatmul.mubr.msk.f32.vlgmr.msra.gmra.mrb[20].mxu1 %vm1563_vm2, %v3176_v56 }
  0xfa   : > { %v1023_v26 = vadd.f32 %v1022_v22, %v3165_v37  ;;  %v1094_v27 = vadd.f32 %v1093_v23, %v3165_v37  ;;  %v1024_v28 = vpop.f32.mrb[9].mxu0  ;;  %v1095_v29 = vpop.f32.mrb[9].mxu1  ;;  %2057 = vmatprep.mubr.f32.mxu0 %v2998_v0  ;;  %2128 = vmatprep.mubr.f32.mxu1 %v2998_v0 }
  0xfb   : > { %v1025_v30 = vadd.f32 %v1024_v28, %v3165_v37  ;;  %v1096_v31 = vadd.f32 %v1095_v29, %v3165_v37  ;;  %1993 = vmatprep.subr.mxu0 %v1537_v20  ;;  %2064 = vmatprep.subr.mxu1 %v1539_v21 }
  0xfc   : > { %1994 = vmatpush1.msra.mxu0 %v1536_v24  ;;  %2065 = vmatpush1.msra.mxu1 %v1538_v25  ;;  %v1540_v36 = vmax.f32 %v1023_v26, 0.0  ;;  %v1542_v38 = vmax.f32 %v1094_v27, 0.0 }
  0xfd   : > { %v1541_v32 = vmax.f32 %v1025_v30, 0.0  ;;  %v1543_v33 = vmax.f32 %v1096_v31, 0.0  ;;  %v1164_v34 = vpop.f32.mrb[10].mxu0  ;;  %v1235_v35 = vpop.f32.mrb[10].mxu1  ;;  %2917 = vmatmul.mubr.msk.f32.vlgmr.msra.gmra.mrb[22].mxu0 %vm1563_vm2, %v3176_v56  ;;  %2918 = vmatmul.mubr.msk.f32.vlgmr.msra.gmra.mrb[22].mxu1 %vm1563_vm2, %v3176_v56 }
  0xfe   : > { %v1165_v39 = vadd.f32 %v1164_v34, %v3165_v37  ;;  %v1236_v40 = vadd.f32 %v1235_v35, %v3165_v37  ;;  %v1166_v41 = vpop.f32.mrb[11].mxu0  ;;  %v1237_v42 = vpop.f32.mrb[11].mxu1  ;;  %2199 = vmatprep.mubr.f32.mxu0 %v2998_v0  ;;  %2270 = vmatprep.mubr.f32.mxu1 %v2998_v0 }
  0xff   : > { %v1167_v43 = vadd.f32 %v1166_v41, %v3165_v37  ;;  %v1238_v44 = vadd.f32 %v1237_v42, %v3165_v37  ;;  %2135 = vmatprep.subr.mxu0 %v1541_v32  ;;  %2206 = vmatprep.subr.mxu1 %v1543_v33 }
 0x100   : > { %2136 = vmatpush1.msra.mxu0 %v1540_v36  ;;  %2207 = vmatpush1.msra.mxu1 %v1542_v38  ;;  %v1544_v49 = vmax.f32 %v1165_v39, 0.0  ;;  %v1546_v50 = vmax.f32 %v1236_v40, 0.0 }
 0x101   : > { %v1545_v45 = vmax.f32 %v1167_v43, 0.0  ;;  %v1547_v46 = vmax.f32 %v1238_v44, 0.0  ;;  %v1306_v47 = vpop.f32.mrb[12].mxu0  ;;  %v1377_v48 = vpop.f32.mrb[12].mxu1  ;;  %2919 = vmatmul.mubr.msk.f32.vlgmr.msra.gmra.mrb[24].mxu0 %vm1563_vm2, %v3176_v56  ;;  %2920 = vmatmul.mubr.msk.f32.vlgmr.msra.gmra.mrb[24].mxu1 %vm1563_vm2, %v3176_v56 }
 0x102   : > { %v1307_v51 = vadd.f32 %v1306_v47, %v3165_v37  ;;  %v1378_v52 = vadd.f32 %v1377_v48, %v3165_v37  ;;  %v1308_v53 = vpop.f32.mrb[13].mxu0  ;;  %v1379_v54 = vpop.f32.mrb[13].mxu1  ;;  %2341 = vmatprep.mubr.f32.mxu0 %v2998_v0  ;;  %2412 = vmatprep.mubr.f32.mxu1 %v2998_v0 }
 0x103   : > { %v1309_v55 = vadd.f32 %v1308_v53, %v3165_v37  ;;  %v1380_v57 = vadd.f32 %v1379_v54, %v3165_v37  ;;  %2277 = vmatprep.subr.mxu0 %v1545_v45  ;;  %2348 = vmatprep.subr.mxu1 %v1547_v46 }
 0x104   : > { %2278 = vmatpush1.msra.mxu0 %v1544_v49  ;;  %2349 = vmatpush1.msra.mxu1 %v1546_v50  ;;  %v1548_v62 = vmax.f32 %v1307_v51, 0.0  ;;  %v1550_v63 = vmax.f32 %v1378_v52, 0.0 }
 0x105   : > { %v1549_v58 = vmax.f32 %v1309_v55, 0.0  ;;  %v1551_v59 = vmax.f32 %v1380_v57, 0.0  ;;  %v1448_v60 = vpop.f32.mrb[14].mxu0  ;;  %v1519_v61 = vpop.f32.mrb[14].mxu1  ;;  %2921 = vmatmul.mubr.msk.f32.vlgmr.msra.gmra.mrb[26].mxu0 %vm1563_vm2, %v3176_v56  ;;  %2922 = vmatmul.mubr.msk.f32.vlgmr.msra.gmra.mrb[26].mxu1 %vm1563_vm2, %v3176_v56 }
 0x106   : > { %v1449_v1 = vadd.f32 %v1448_v60, %v3165_v37  ;;  %v1520_v2 = vadd.f32 %v1519_v61, %v3165_v37  ;;  %v1450_v3 = vpop.f32.mrb[15].mxu0  ;;  %v1521_v4 = vpop.f32.mrb[15].mxu1  ;;  %2483 = vmatprep.mubr.f32.mxu0 %v2998_v0  ;;  %2554 = vmatprep.mubr.f32.mxu1 %v2998_v0 }
 0x107   : > { %v1451_v5 = vadd.f32 %v1450_v3, %v3165_v37  ;;  %v1522_v6 = vadd.f32 %v1521_v4, %v3165_v37  ;;  %2419 = vmatprep.subr.mxu0 %v1549_v58  ;;  %2490 = vmatprep.subr.mxu1 %v1551_v59  ;;  %v3251_v37 = vpop.permute.xlu0 %1560 }
 0x108   : > { %2420 = vmatpush1.msra.mxu0 %v1548_v62  ;;  %2491 = vmatpush1.msra.mxu1 %v1550_v63  ;;  %v1552_v9 = vmax.f32 %v1449_v1, 0.0  ;;  %v1554_v10 = vmax.f32 %v1520_v2, 0.0 }
 0x109   : > { %v1553_v7 = vmax.f32 %v1451_v5, 0.0  ;;  %v1555_v8 = vmax.f32 %v1522_v6, 0.0  ;;  %2923 = vmatmul.mubr.msk.f32.vlgmr.msra.gmra.mrb[28].mxu0 %vm1563_vm2, %v3176_v56  ;;  %2924 = vmatmul.mubr.msk.f32.vlgmr.msra.gmra.mrb[28].mxu1 %vm1563_vm2, %v3176_v56 }
 0x10a   : > { %2625 = vmatprep.mubr.f32.mxu0 %v2998_v0  ;;  %2696 = vmatprep.mubr.f32.mxu1 %v2998_v0 }
 0x10b   : > { %2561 = vmatprep.subr.mxu0 %v1553_v7  ;;  %2632 = vmatprep.subr.mxu1 %v1555_v8 }
 0x10c   : > { %2562 = vmatpush1.msra.mxu0 %v1552_v9  ;;  %2633 = vmatpush1.msra.mxu1 %v1554_v10 }
 0x10d   : > { %2925 = vmatmul.mubr.msk.f32.vlgmr.msra.gmra.mrb[30].mxu0 %vm1563_vm2, %v3176_v56  ;;  %2926 = vmatmul.mubr.msk.f32.vlgmr.msra.gmra.mrb[30].mxu1 %vm1563_vm2, %v3176_v56 }
 0x1c4   : > { %v1633_v11 = vpop.f32.mrb[16].mxu0  ;;  %v1704_v12 = vpop.f32.mrb[16].mxu1 }
 0x1c5   : > { %v1634_v13 = vadd.f32 %v1633_v11, %v3251_v37  ;;  %v1705_v14 = vadd.f32 %v1704_v12, %v3251_v37  ;;  %v1635_v0 = vpop.f32.mrb[17].mxu0  ;;  %v1706_v15 = vpop.f32.mrb[17].mxu1 }
 0x1c6   : > { %v1636_v56 = vadd.f32 %v1635_v0, %v3251_v37  ;;  %v1707_v16 = vadd.f32 %v1706_v15, %v3251_v37 }
 0x1c7   : > { %v2703_v17 = vmax.f32 %v1634_v13, 0.0  ;;  %v2705_v18 = vmax.f32 %v1705_v14, 0.0 }
 0x1c8   : > { %v2704_v19 = vmax.f32 %v1636_v56, 0.0  ;;  %v2706_v20 = vmax.f32 %v1707_v16, 0.0  ;;  %v1775_v21 = vpop.f32.mrb[18].mxu0  ;;  %v1846_v22 = vpop.f32.mrb[18].mxu1 }
 0x1c9   : > { %2735 = vst [vmem:[%s3258_s12] sm:$0xff] %v2703_v17  ;;  %2737 = vst [vmem:[%s3258_s12 + $0x10] sm:$0xff] %v2705_v18  ;;  %v1776_v23 = vadd.f32 %v1775_v21, %v3251_v37  ;;  %v1847_v24 = vadd.f32 %v1846_v22, %v3251_v37  ;;  %v1777_v25 = vpop.f32.mrb[19].mxu0  ;;  %v1848_v26 = vpop.f32.mrb[19].mxu1 }
 0x1ca   : > { %2736 = vst [vmem:[%s3258_s12 + $0x8] sm:$0xff] %v2704_v19  ;;  %2738 = vst [vmem:[%s3258_s12 + $0x18] sm:$0xff] %v2706_v20  ;;  %v1778_v27 = vadd.f32 %v1777_v25, %v3251_v37  ;;  %v1849_v28 = vadd.f32 %v1848_v26, %v3251_v37 }
 0x1cb   : > { %v2707_v29 = vmax.f32 %v1776_v23, 0.0  ;;  %v2709_v30 = vmax.f32 %v1847_v24, 0.0 }
 0x1cc   : > { %v2708_v31 = vmax.f32 %v1778_v27, 0.0  ;;  %v2710_v32 = vmax.f32 %v1849_v28, 0.0  ;;  %v1917_v33 = vpop.f32.mrb[20].mxu0  ;;  %v1988_v34 = vpop.f32.mrb[20].mxu1 }
 0x1cd   : > { %2739 = vst [vmem:[%s3258_s12 + $0x20] sm:$0xff] %v2707_v29  ;;  %2741 = vst [vmem:[%s3258_s12 + $0x30] sm:$0xff] %v2709_v30  ;;  %v1918_v35 = vadd.f32 %v1917_v33, %v3251_v37  ;;  %v1989_v36 = vadd.f32 %v1988_v34, %v3251_v37  ;;  %v1919_v38 = vpop.f32.mrb[21].mxu0  ;;  %v1990_v39 = vpop.f32.mrb[21].mxu1 }
 0x1ce   : > { %2740 = vst [vmem:[%s3258_s12 + $0x28] sm:$0xff] %v2708_v31  ;;  %2742 = vst [vmem:[%s3258_s12 + $0x38] sm:$0xff] %v2710_v32  ;;  %v1920_v40 = vadd.f32 %v1919_v38, %v3251_v37  ;;  %v1991_v41 = vadd.f32 %v1990_v39, %v3251_v37 }
 0x1cf   : > { %v2711_v42 = vmax.f32 %v1918_v35, 0.0  ;;  %v2713_v43 = vmax.f32 %v1989_v36, 0.0 }
 0x1d0   : > { %v2712_v44 = vmax.f32 %v1920_v40, 0.0  ;;  %v2714_v45 = vmax.f32 %v1991_v41, 0.0  ;;  %v2059_v46 = vpop.f32.mrb[22].mxu0  ;;  %v2130_v47 = vpop.f32.mrb[22].mxu1 }
 0x1d1   : > { %2743 = vst [vmem:[%s3258_s12 + $0x40] sm:$0xff] %v2711_v42  ;;  %2745 = vst [vmem:[%s3258_s12 + $0x50] sm:$0xff] %v2713_v43  ;;  %v2060_v48 = vadd.f32 %v2059_v46, %v3251_v37  ;;  %v2131_v49 = vadd.f32 %v2130_v47, %v3251_v37  ;;  %v2061_v50 = vpop.f32.mrb[23].mxu0  ;;  %v2132_v51 = vpop.f32.mrb[23].mxu1 }
 0x1d2   : > { %2744 = vst [vmem:[%s3258_s12 + $0x48] sm:$0xff] %v2712_v44  ;;  %2746 = vst [vmem:[%s3258_s12 + $0x58] sm:$0xff] %v2714_v45  ;;  %v2062_v52 = vadd.f32 %v2061_v50, %v3251_v37  ;;  %v2133_v53 = vadd.f32 %v2132_v51, %v3251_v37 }
 0x1d3   : > { %v2715_v54 = vmax.f32 %v2060_v48, 0.0  ;;  %v2717_v55 = vmax.f32 %v2131_v49, 0.0 }
 0x1d4   : > { %v2716_v57 = vmax.f32 %v2062_v52, 0.0  ;;  %v2718_v58 = vmax.f32 %v2133_v53, 0.0  ;;  %v2201_v59 = vpop.f32.mrb[24].mxu0  ;;  %v2272_v60 = vpop.f32.mrb[24].mxu1 }
 0x1d5   : > { %2747 = vst [vmem:[%s3258_s12 + $0x60] sm:$0xff] %v2715_v54  ;;  %2749 = vst [vmem:[%s3258_s12 + $0x70] sm:$0xff] %v2717_v55  ;;  %v2202_v61 = vadd.f32 %v2201_v59, %v3251_v37  ;;  %v2273_v62 = vadd.f32 %v2272_v60, %v3251_v37  ;;  %v2203_v63 = vpop.f32.mrb[25].mxu0  ;;  %v2274_v1 = vpop.f32.mrb[25].mxu1 }
 0x1d6   : > { %2748 = vst [vmem:[%s3258_s12 + $0x68] sm:$0xff] %v2716_v57  ;;  %2750 = vst [vmem:[%s3258_s12 + $0x78] sm:$0xff] %v2718_v58  ;;  %v2204_v2 = vadd.f32 %v2203_v63, %v3251_v37  ;;  %v2275_v3 = vadd.f32 %v2274_v1, %v3251_v37 }
 0x1d7   : > { %v2719_v4 = vmax.f32 %v2202_v61, 0.0  ;;  %v2721_v5 = vmax.f32 %v2273_v62, 0.0 }
 0x1d8   : > { %v2720_v6 = vmax.f32 %v2204_v2, 0.0  ;;  %v2722_v7 = vmax.f32 %v2275_v3, 0.0  ;;  %v2343_v8 = vpop.f32.mrb[26].mxu0  ;;  %v2414_v9 = vpop.f32.mrb[26].mxu1 }
 0x1d9   : > { %2751 = vst [vmem:[%s3258_s12 + $0x80] sm:$0xff] %v2719_v4  ;;  %2753 = vst [vmem:[%s3258_s12 + $0x90] sm:$0xff] %v2721_v5  ;;  %v2344_v10 = vadd.f32 %v2343_v8, %v3251_v37  ;;  %v2415_v11 = vadd.f32 %v2414_v9, %v3251_v37  ;;  %v2345_v12 = vpop.f32.mrb[27].mxu0  ;;  %v2416_v13 = vpop.f32.mrb[27].mxu1 }
 0x1da   : > { %2752 = vst [vmem:[%s3258_s12 + $0x88] sm:$0xff] %v2720_v6  ;;  %2754 = vst [vmem:[%s3258_s12 + $0x98] sm:$0xff] %v2722_v7  ;;  %v2346_v14 = vadd.f32 %v2345_v12, %v3251_v37  ;;  %v2417_v0 = vadd.f32 %v2416_v13, %v3251_v37 }
 0x1db   : > { %v2723_v15 = vmax.f32 %v2344_v10, 0.0  ;;  %v2725_v56 = vmax.f32 %v2415_v11, 0.0 }
 0x1dc   : > { %v2724_v16 = vmax.f32 %v2346_v14, 0.0  ;;  %v2726_v17 = vmax.f32 %v2417_v0, 0.0  ;;  %v2485_v18 = vpop.f32.mrb[28].mxu0  ;;  %v2556_v19 = vpop.f32.mrb[28].mxu1 }
 0x1dd   : > { %2755 = vst [vmem:[%s3258_s12 + $0xa0] sm:$0xff] %v2723_v15  ;;  %2757 = vst [vmem:[%s3258_s12 + $0xb0] sm:$0xff] %v2725_v56  ;;  %v2486_v20 = vadd.f32 %v2485_v18, %v3251_v37  ;;  %v2557_v21 = vadd.f32 %v2556_v19, %v3251_v37  ;;  %v2487_v22 = vpop.f32.mrb[29].mxu0  ;;  %v2558_v23 = vpop.f32.mrb[29].mxu1 }
 0x1de   : > { %2756 = vst [vmem:[%s3258_s12 + $0xa8] sm:$0xff] %v2724_v16  ;;  %2758 = vst [vmem:[%s3258_s12 + $0xb8] sm:$0xff] %v2726_v17  ;;  %v2488_v24 = vadd.f32 %v2487_v22, %v3251_v37  ;;  %v2559_v25 = vadd.f32 %v2558_v23, %v3251_v37 }
 0x1df   : > { %v2727_v26 = vmax.f32 %v2486_v20, 0.0  ;;  %v2729_v27 = vmax.f32 %v2557_v21, 0.0 }
 0x1e0   : > { %v2728_v28 = vmax.f32 %v2488_v24, 0.0  ;;  %v2730_v29 = vmax.f32 %v2559_v25, 0.0  ;;  %v2627_v30 = vpop.f32.mrb[30].mxu0  ;;  %v2698_v31 = vpop.f32.mrb[30].mxu1 }
 0x1e1   : > { %2759 = vst [vmem:[%s3258_s12 + $0xc0] sm:$0xff] %v2727_v26  ;;  %2761 = vst [vmem:[%s3258_s12 + $0xd0] sm:$0xff] %v2729_v27  ;;  %v2628_v32 = vadd.f32 %v2627_v30, %v3251_v37  ;;  %v2699_v33 = vadd.f32 %v2698_v31, %v3251_v37  ;;  %v2629_v34 = vpop.f32.mrb[31].mxu0  ;;  %v2700_v35 = vpop.f32.mrb[31].mxu1 }
 0x1e2   : > { %2760 = vst [vmem:[%s3258_s12 + $0xc8] sm:$0xff] %v2728_v28  ;;  %2762 = vst [vmem:[%s3258_s12 + $0xd8] sm:$0xff] %v2730_v29  ;;  %v2630_v36 = vadd.f32 %v2629_v34, %v3251_v37  ;;  %v2701_v38 = vadd.f32 %v2700_v35, %v3251_v37 }
 0x1e3   : > { %v2731_v39 = vmax.f32 %v2628_v32, 0.0  ;;  %v2733_v40 = vmax.f32 %v2699_v33, 0.0 }
 0x1e4   : > { %v2732_v41 = vmax.f32 %v2630_v36, 0.0  ;;  %v2734_v42 = vmax.f32 %v2701_v38, 0.0 }
 0x1e5   : > { %2763 = vst [vmem:[%s3258_s12 + $0xe0] sm:$0xff] %v2731_v39  ;;  %2765 = vst [vmem:[%s3258_s12 + $0xf0] sm:$0xff] %v2733_v40 }
 0x1e6   : > { %2764 = vst [vmem:[%s3258_s12 + $0xe8] sm:$0xff] %v2732_v41  ;;  %2766 = vst [vmem:[%s3258_s12 + $0xf8] sm:$0xff] %v2734_v42 }
 0x1e7 PF: > { %s15_s20 = sadd.s32 1, %s2996_s20   ;;  %s3337_s18 = smov %s2992_s19 }
 0x1e8   : > { %p12_p5 = scmp.ge.s32.totalorder %s15_s20, 4   ;;  %s3338_s19 = smov %s3340_s21 }
 0x1ea   :  { %14 = sbr.rel (!%p12_p5) target bundleno = 2 (0x2), region = 70 }

</bundles_post_ra>
